<compile_context>
chip_gen: v5e
topology: v5e:2x2
jax: 0.10.0
libtpu: 0.0.40
codegen_flags: <defaults>
</compile_context>

<pallas_src>
import functools

import jax
import jax.numpy as jnp
from jax.experimental import pallas as pl
from jax.experimental.pallas import tpu as pltpu

LANE = 128      # lane width (last axis)
SUBLANE = 8     # sublane width (second-to-last axis)
TARGET_GRID_STEPS = 4   # enough steps for megacore sharding + DMA overlap


def _round_up(x, m):
    return (x + m - 1) // m * m


def _cdiv(a, b):
    return (a + b - 1) // b


def _maybe_pad_cast(a, rows, cols, dtype):
    """Pad a 2-D array to (rows, cols) / cast, but only if actually needed."""
    if a.shape != (rows, cols):
        a = jnp.pad(a, ((0, rows - a.shape[0]), (0, cols - a.shape[1])))
    if a.dtype != jnp.dtype(dtype):
        a = a.astype(dtype)
    return a


def _vmem_limit_bytes():
    """Per-generation VMEM budget (v5e/v6e: 128 MiB physical; v7x: 64 MiB)."""
    try:
        kind = jax.devices()[0].device_kind.lower()
    except Exception:  # pragma: no cover - e.g. interpret mode on CPU hosts
        kind = ""
    if ("v5" in kind) or ("v6" in kind):
        return 100 * 1024 * 1024
    return 48 * 1024 * 1024   # conservative default; correct for v7x


def classifier_kernel(x_ref, w1_ref, b1_ref, w2_ref, b2_ref, w3_ref, b3_ref,
                      o_ref, *, n_pad_out):
    """One (TILE_B, *) batch tile: 3x (matmul + bias + ReLU), then softmax."""
    dot_dtype = w1_ref.dtype   # bf16 or f32 MXU operands; accumulation is f32

    # fc1 -> ReLU
    h = jnp.dot(x_ref[...], w1_ref[...], preferred_element_type=jnp.float32)
    h = jnp.maximum(h + b1_ref[...], 0.0)

    # fc2 -> ReLU
    h = jnp.dot(h.astype(dot_dtype), w2_ref[...],
                preferred_element_type=jnp.float32)
    h = jnp.maximum(h + b2_ref[...], 0.0)

    # fc3 -> ReLU
    h = jnp.dot(h.astype(dot_dtype), w3_ref[...],
                preferred_element_type=jnp.float32)
    h = jnp.maximum(h + b3_ref[...], 0.0)

    # Numerically-stable softmax over the class (lane) axis, exact divide.
    m = jnp.max(h, axis=-1, keepdims=True)
    e = jnp.exp(h - m)
    s = jnp.sum(e, axis=-1, keepdims=True)
    if n_pad_out:
        # Padded W3 columns / b3 entries are zero, so after ReLU every padded
        # logit is exactly 0 and contributes exp(0 - m) to the sum.  Subtract
        # that scalar-per-row correction instead of an iota+where lane mask.
        # Padded output lanes hold garbage and are sliced off in the wrapper.
        s = s - jnp.float32(n_pad_out) * jnp.exp(-m)
    o_ref[...] = (e / s).astype(o_ref.dtype)


def classifier_net(x, params, *, tile_b=None, compute_dtype=jnp.bfloat16):
    """x: (B, input) f32.  params: logical-shaped, pre-transposed weights.

    compute_dtype controls the MXU operand dtype only (bf16 default for
    native-rate MXU + halved HBM traffic); accumulation and all elementwise
    math (bias, ReLU, softmax) are f32.  Use jnp.float32 for strict parity.
    """
    w1, b1 = params["w1"], params["b1"]
    w2, b2 = params["w2"], params["b2"]
    w3, b3 = params["w3"], params["b3"]

    B, in_dim = x.shape
    hidden = w1.shape[1]
    out_dim = w3.shape[1]

    vmem_limit = _vmem_limit_bytes()
    if tile_b is None:
        # Bigger batch tiles on the 128 MiB-VMEM generations (v5e/v6e).
        tile_b = 1024 if vmem_limit > 64 * 1024 * 1024 else 512

    # Pad feature axes to full lanes so every load/store is lane-dense.
    # NOTE (v6e/v7x): the MXU is 2x256^2, so dims that are 128- but not
    # 256-aligned half-fill it; for >=256 hidden/output sizes prefer multiples
    # of 256.  For tiny dims (like this demo) the kernel is DMA/overhead-bound
    # and further padding would only waste bytes.
    Kp = _round_up(in_dim, LANE)
    Hp = _round_up(hidden, LANE)
    Op = _round_up(out_dim, LANE)

    # Batch tiling: multiple of the sublane width, and small enough that the
    # grid has ~TARGET_GRID_STEPS steps when the batch allows (feeds both v7x
    # TensorCores and gives the x/out DMA pipeline something to overlap).
    Bs = _round_up(B, SUBLANE)
    tb = min(tile_b, Bs,
             max(SUBLANE, _round_up(_cdiv(Bs, TARGET_GRID_STEPS), SUBLANE)))
    Bp = _round_up(Bs, tb)
    grid = (Bp // tb,)

    itemsize = jnp.dtype(compute_dtype).itemsize

    # VMEM budget check for the all-weights-resident design: single-buffered
    # weights/biases + double-buffered x/out tiles + f32 intermediates.
    weight_vmem = (Kp * Hp + Hp * Hp + Hp * Op) * itemsize + (2 * Hp + Op) * 4
    io_vmem = 2 * (tb * Kp * itemsize + tb * Op * 4)
    scratch_vmem = 4 * tb * max(Hp, Op) * 4
    if (jnp.dtype(compute_dtype) == jnp.dtype(jnp.float32)
            and weight_vmem + io_vmem + scratch_vmem > vmem_limit):
        # f32-resident weights don't fit this generation's VMEM: fall back to
        # bf16 MXU operands (f32 accumulation) rather than spilling/OOMing.
        # TODO(synk): for strict-f32 large-hidden configs, K-tile the Hp x Hp
        # fc2 matmul over an "arbitrary" grid axis with a pl.when-initialized
        # f32 VMEM accumulator instead of holding every weight resident.
        return classifier_net(x, params, tile_b=tile_b,
                              compute_dtype=jnp.bfloat16)

    xp = _maybe_pad_cast(x, Bp, Kp, compute_dtype)
    w1p = _maybe_pad_cast(w1, Kp, Hp, compute_dtype)
    w2p = _maybe_pad_cast(w2, Hp, Hp, compute_dtype)
    w3p = _maybe_pad_cast(w3, Hp, Op, compute_dtype)
    # Biases stay f32 (added to the f32 accumulator on the VPU).
    b1p = _maybe_pad_cast(b1.reshape(1, -1), 1, Hp, jnp.float32)
    b2p = _maybe_pad_cast(b2.reshape(1, -1), 1, Hp, jnp.float32)
    b3p = _maybe_pad_cast(b3.reshape(1, -1), 1, Op, jnp.float32)

    def resident():
        # Whole array, pinned in VMEM for the entire kernel: one copy, no
        # per-grid-step re-DMA and no double-buffering.
        return pl.BlockSpec(memory_space=pltpu.MemorySpace.VMEM)

    flops = 2 * Bp * (Kp * Hp + Hp * Hp + Hp * Op)
    transcendentals = Bp * (Op + 1)      # exp over padded lanes + exp(-m)/row
    bytes_accessed = (Bp * Kp * itemsize                         # x in
                      + (Kp * Hp + Hp * Hp + Hp * Op) * itemsize  # weights (1x)
                      + (2 * Hp + Op) * 4                         # biases (f32)
                      + Bp * Op * 4)                              # out
    cost = pl.CostEstimate(flops=int(flops),
                           transcendentals=int(transcendentals),
                           bytes_accessed=int(bytes_accessed))

    out_padded = pl.pallas_call(
        functools.partial(classifier_kernel, n_pad_out=Op - out_dim),
        out_shape=jax.ShapeDtypeStruct((Bp, Op), jnp.float32),
        grid=grid,
        in_specs=[
            pl.BlockSpec((tb, Kp), lambda i: (i, 0)),   # x: batch-tiled, pipelined
            resident(), resident(),                     # fc1 w, b
            resident(), resident(),                     # fc2 w, b
            resident(), resident(),                     # fc3 w, b
        ],
        out_specs=pl.BlockSpec((tb, Op), lambda i: (i, 0)),
        compiler_params=pltpu.CompilerParams(
            dimension_semantics=("parallel",),          # megacore on v7x
            vmem_limit_bytes=vmem_limit),
        cost_estimate=cost,
    )(xp, w1p, b1p, w2p, b2p, w3p, b3p)

    return out_padded[:B, :out_dim]


def init_params(key, input_dim, hidden, output):
    """PyTorch nn.Linear default init (uniform +-1/sqrt(fan_in)).
    Weights stored as (in, out) = PyTorch weight transposed; biases as (out,)."""
    keys = jax.random.split(key, 6)

    def lin(kw, kb, fan_in, fan_out):
        bound = float(fan_in) ** -0.5
        w = jax.random.uniform(kw, (fan_in, fan_out), jnp.float32, -bound, bound)
        b = jax.random.uniform(kb, (fan_out,), jnp.float32, -bound, bound)
        return w, b

    w1, b1 = lin(keys[0], keys[1], input_dim, hidden)
    w2, b2 = lin(keys[2], keys[3], hidden, hidden)
    w3, b3 = lin(keys[4], keys[5], hidden, output)
    return dict(w1=w1, b1=b1, w2=w2, b2=b2, w3=w3, b3=b3)


def reference(x, p):
    h = jnp.maximum(x @ p["w1"] + p["b1"], 0.0)
    h = jnp.maximum(h @ p["w2"] + p["b2"], 0.0)
    h = jnp.maximum(h @ p["w3"] + p["b3"], 0.0)
    return jax.nn.softmax(h, axis=1)


if __name__ == "__main__":
    key = jax.random.PRNGKey(0)
    k_x, k_p = jax.random.split(key)

    B, INPUT, HIDDEN, OUTPUT = 8, 16, 32, 8
    x = jax.random.normal(k_x, (B, INPUT), jnp.float32)
    params = init_params(k_p, INPUT, HIDDEN, OUTPUT)

    ref = reference(x, params)

    # Strict-parity f32 path.
    out_f32 = jax.block_until_ready(
        classifier_net(x, params, compute_dtype=jnp.float32))
    assert out_f32.shape == (B, OUTPUT)
    assert jnp.allclose(out_f32, ref, atol=2e-3, rtol=2e-3), \
        float(jnp.max(jnp.abs(out_f32 - ref)))
    assert jnp.allclose(jnp.sum(out_f32, axis=1), 1.0, atol=1e-3)

    # Default fast path (bf16 MXU operands, f32 accumulation / softmax).
    out_bf16 = jax.block_until_ready(classifier_net(x, params))
    assert out_bf16.shape == (B, OUTPUT)
    assert jnp.allclose(out_bf16, ref, atol=5e-2, rtol=5e-2), \
        float(jnp.max(jnp.abs(out_bf16 - ref)))
    assert jnp.allclose(jnp.sum(out_bf16, axis=1), 1.0, atol=1e-3)

    print("KERNEL_OK")
</pallas_src>

<mosaic_0001>
module attributes {stable_mosaic.version = 11 : i64} {
  func.func @classifier_kernel(%arg0: i32, %arg1: memref<8x128xf32, #tpu.memory_space<vmem>>, %arg2: memref<128x128xf32, #tpu.memory_space<vmem>>, %arg3: memref<1x128xf32, #tpu.memory_space<vmem>>, %arg4: memref<128x128xf32, #tpu.memory_space<vmem>>, %arg5: memref<1x128xf32, #tpu.memory_space<vmem>>, %arg6: memref<128x128xf32, #tpu.memory_space<vmem>>, %arg7: memref<1x128xf32, #tpu.memory_space<vmem>>, %arg8: memref<8x128xf32, #tpu.memory_space<vmem>>) attributes {dimension_semantics = [#tpu.dimension_semantics<parallel>], iteration_bounds = array<i64: 1>, scalar_prefetch = 0 : i64, scratch_operands = 0 : i64, tpu.core_type = #tpu.core_type<tc>, window_params = [{transform_indices = @transform_0, window_bounds = array<i64: 8, 128>}, {pipeline_mode = #tpu.pipeline_mode<synchronous>, transform_indices = @transform_1, window_bounds = array<i64: 128, 128>}, {pipeline_mode = #tpu.pipeline_mode<synchronous>, transform_indices = @transform_2, window_bounds = array<i64: 1, 128>}, {pipeline_mode = #tpu.pipeline_mode<synchronous>, transform_indices = @transform_3, window_bounds = array<i64: 128, 128>}, {pipeline_mode = #tpu.pipeline_mode<synchronous>, transform_indices = @transform_4, window_bounds = array<i64: 1, 128>}, {pipeline_mode = #tpu.pipeline_mode<synchronous>, transform_indices = @transform_5, window_bounds = array<i64: 128, 128>}, {pipeline_mode = #tpu.pipeline_mode<synchronous>, transform_indices = @transform_6, window_bounds = array<i64: 1, 128>}, {transform_indices = @transform_7, window_bounds = array<i64: 8, 128>}]} {
    %c0 = arith.constant 0 : index
    %c0_0 = arith.constant 0 : index
    %0 = vector.load %arg1[%c0, %c0_0] : memref<8x128xf32, #tpu.memory_space<vmem>>, vector<8x128xf32>
    %c0_1 = arith.constant 0 : index
    %c0_2 = arith.constant 0 : index
    %1 = vector.load %arg2[%c0_1, %c0_2] : memref<128x128xf32, #tpu.memory_space<vmem>>, vector<128x128xf32>
    %cst = arith.constant dense<0.000000e+00> : vector<8x128xf32>
    %2 = tpu.matmul %0, %1, %cst {dimension_numbers = #tpu.dot_dimension_numbers<[1], [0], [0], [1], [0, 0, 1, 1], [], []>} : vector<8x128xf32>, vector<128x128xf32>, vector<8x128xf32> -> vector<8x128xf32>
    %c0_3 = arith.constant 0 : index
    %c0_4 = arith.constant 0 : index
    %3 = vector.load %arg3[%c0_3, %c0_4] : memref<1x128xf32, #tpu.memory_space<vmem>>, vector<1x128xf32>
    %4 = vector.broadcast %3 : vector<1x128xf32> to vector<8x128xf32>
    %5 = arith.addf %2, %4 : vector<8x128xf32>
    %cst_5 = arith.constant 0.000000e+00 : f32
    %6 = vector.broadcast %cst_5 : f32 to vector<8x128xf32>
    %7 = arith.maximumf %5, %6 : vector<8x128xf32>
    %c0_6 = arith.constant 0 : index
    %c0_7 = arith.constant 0 : index
    %8 = vector.load %arg4[%c0_6, %c0_7] : memref<128x128xf32, #tpu.memory_space<vmem>>, vector<128x128xf32>
    %cst_8 = arith.constant dense<0.000000e+00> : vector<8x128xf32>
    %9 = tpu.matmul %7, %8, %cst_8 {dimension_numbers = #tpu.dot_dimension_numbers<[1], [0], [0], [1], [0, 0, 1, 1], [], []>} : vector<8x128xf32>, vector<128x128xf32>, vector<8x128xf32> -> vector<8x128xf32>
    %c0_9 = arith.constant 0 : index
    %c0_10 = arith.constant 0 : index
    %10 = vector.load %arg5[%c0_9, %c0_10] : memref<1x128xf32, #tpu.memory_space<vmem>>, vector<1x128xf32>
    %11 = vector.broadcast %10 : vector<1x128xf32> to vector<8x128xf32>
    %12 = arith.addf %9, %11 : vector<8x128xf32>
    %cst_11 = arith.constant 0.000000e+00 : f32
    %13 = vector.broadcast %cst_11 : f32 to vector<8x128xf32>
    %14 = arith.maximumf %12, %13 : vector<8x128xf32>
    %c0_12 = arith.constant 0 : index
    %c0_13 = arith.constant 0 : index
    %15 = vector.load %arg6[%c0_12, %c0_13] : memref<128x128xf32, #tpu.memory_space<vmem>>, vector<128x128xf32>
    %cst_14 = arith.constant dense<0.000000e+00> : vector<8x128xf32>
    %16 = tpu.matmul %14, %15, %cst_14 {dimension_numbers = #tpu.dot_dimension_numbers<[1], [0], [0], [1], [0, 0, 1, 1], [], []>} : vector<8x128xf32>, vector<128x128xf32>, vector<8x128xf32> -> vector<8x128xf32>
    %c0_15 = arith.constant 0 : index
    %c0_16 = arith.constant 0 : index
    %17 = vector.load %arg7[%c0_15, %c0_16] : memref<1x128xf32, #tpu.memory_space<vmem>>, vector<1x128xf32>
    %18 = vector.broadcast %17 : vector<1x128xf32> to vector<8x128xf32>
    %19 = arith.addf %16, %18 : vector<8x128xf32>
    %cst_17 = arith.constant 0.000000e+00 : f32
    %20 = vector.broadcast %cst_17 : f32 to vector<8x128xf32>
    %21 = arith.maximumf %19, %20 : vector<8x128xf32>
    %cst_18 = arith.constant dense<0xFF800000> : vector<8xf32>
    %22 = vector.multi_reduction <maximumf>, %21, %cst_18 [1] : vector<8x128xf32> to vector<8xf32>
    %23 = vector.shape_cast %22 : vector<8xf32> to vector<8x1xf32>
    %24 = vector.broadcast %23 : vector<8x1xf32> to vector<8x128xf32>
    %25 = arith.subf %21, %24 : vector<8x128xf32>
    %26 = math.exp %25 : vector<8x128xf32>
    %cst_19 = arith.constant dense<0.000000e+00> : vector<8xf32>
    %27 = vector.multi_reduction <add>, %26, %cst_19 [1] : vector<8x128xf32> to vector<8xf32>
    %28 = vector.shape_cast %27 : vector<8xf32> to vector<8x1xf32>
    %cst_20 = arith.constant 0.000000e+00 : f32
    %29 = vector.broadcast %cst_20 : f32 to vector<8x1xf32>
    %30 = arith.subf %29, %23 : vector<8x1xf32>
    %31 = math.exp %30 : vector<8x1xf32>
    %cst_21 = arith.constant 1.200000e+02 : f32
    %32 = vector.broadcast %cst_21 : f32 to vector<8x1xf32>
    %33 = arith.mulf %32, %31 : vector<8x1xf32>
    %34 = arith.subf %28, %33 : vector<8x1xf32>
    %35 = vector.broadcast %34 : vector<8x1xf32> to vector<8x128xf32>
    %36 = arith.divf %26, %35 : vector<8x128xf32>
    %c0_22 = arith.constant 0 : index
    %c0_23 = arith.constant 0 : index
    %37 = vector.load %arg8[%c0_22, %c0_23] : memref<8x128xf32, #tpu.memory_space<vmem>>, vector<8x128xf32>
    tpu.vector_store %arg8[%c0_22, %c0_23], %36 {strides = array<i32>} : memref<8x128xf32, #tpu.memory_space<vmem>>, vector<8x128xf32>,
    return
  }
  func.func @transform_0(%arg0: i32) -> (i32, i32) {
    %c0_i32 = arith.constant 0 : i32
    %c0_i32_0 = arith.constant 0 : i32
    return %arg0, %c0_i32 : i32, i32
  }
  func.func @transform_1(%arg0: i32) -> (i32, i32) {
    %c0_i32 = arith.constant 0 : i32
    %c0_i32_0 = arith.constant 0 : i32
    %c0_i32_1 = arith.constant 0 : i32
    return %c0_i32, %c0_i32_0 : i32, i32
  }
  func.func @transform_2(%arg0: i32) -> (i32, i32) {
    %c0_i32 = arith.constant 0 : i32
    %c0_i32_0 = arith.constant 0 : i32
    %c0_i32_1 = arith.constant 0 : i32
    return %c0_i32, %c0_i32_0 : i32, i32
  }
  func.func @transform_3(%arg0: i32) -> (i32, i32) {
    %c0_i32 = arith.constant 0 : i32
    %c0_i32_0 = arith.constant 0 : i32
    %c0_i32_1 = arith.constant 0 : i32
    return %c0_i32, %c0_i32_0 : i32, i32
  }
  func.func @transform_4(%arg0: i32) -> (i32, i32) {
    %c0_i32 = arith.constant 0 : i32
    %c0_i32_0 = arith.constant 0 : i32
    %c0_i32_1 = arith.constant 0 : i32
    return %c0_i32, %c0_i32_0 : i32, i32
  }
  func.func @transform_5(%arg0: i32) -> (i32, i32) {
    %c0_i32 = arith.constant 0 : i32
    %c0_i32_0 = arith.constant 0 : i32
    %c0_i32_1 = arith.constant 0 : i32
    return %c0_i32, %c0_i32_0 : i32, i32
  }
  func.func @transform_6(%arg0: i32) -> (i32, i32) {
    %c0_i32 = arith.constant 0 : i32
    %c0_i32_0 = arith.constant 0 : i32
    %c0_i32_1 = arith.constant 0 : i32
    return %c0_i32, %c0_i32_0 : i32, i32
  }
  func.func @transform_7(%arg0: i32) -> (i32, i32) {
    %c0_i32 = arith.constant 0 : i32
    %c0_i32_0 = arith.constant 0 : i32
    return %arg0, %c0_i32 : i32, i32
  }
}

</mosaic_0001>

<bundles_post_ra>
// kernel: tpu_custom_call.1
= control target key start
LH: loop header
LB: loop body
LE: loop exit
PB: predicated region body
PF: predicated region fallthrough
CT: control target
= control target key end

     0   :  { %12 = vsyncpa [#allocation3], 0  ;;  %s474_s0 = inlined_call_operand.hbm [shape: f32[8,128], index: 0, kind: input, shape index: {}]   ;;  %s475_s1 = inlined_call_operand.hbm [shape: f32[128,128], index: 1, kind: input, shape index: {}]   ;;  %s476_s2 = inlined_call_operand.vmem [shape: f32[1,128], index: 2, kind: input, shape index: {}]   ;;  %s477_s3 = inlined_call_operand.hbm [shape: f32[128,128], index: 3, kind: input, shape index: {}]   ;;  %s478_s4 = inlined_call_operand.vmem [shape: f32[1,128], index: 4, kind: input, shape index: {}]   ;;  %s479_s5 = inlined_call_operand.hbm [shape: f32[128,128], index: 5, kind: input, shape index: {}]   ;;  %s480_s6 = inlined_call_operand.vmem [shape: f32[1,128], index: 6, kind: input, shape index: {}]   ;;  %s481_s7 = inlined_call_operand.hbm [shape: f32[8,128], index: 7, kind: output, shape index: {}]  }
   0x1   :  { %13 = vsyncpa [#allocation6], 0 }
   0x2   :  { %14 = vsyncpa [#allocation9], 0  ;;  %s31_s26 = sshll.u32 %s475_s1, 4  ;;  %s32_s26 = int_to_ptr.hbm [resolvable:$true] %s31_s26 }
   0x3   :  { %15 = vsyncpa [#allocation4], 0  ;;  %s403_s27 = smov [#allocation5]   ;;  %s21_s8 = sshll.u32 %s474_s0, 4  ;;  %s22_s8 = int_to_ptr.hbm [resolvable:$true] %s21_s8 }
   0x4   :  { %s33_s28 = sshll.u32 %s403_s27, 4  ;;  %s404_s9 = smov 128   ;;  %s34_s28 = int_to_ptr.vmem [resolvable:$true] %s33_s28 }
   0x5   :  { %s405_s10 = smov 8   ;;  %s406_s11 = smov [#allocation2]  }
   0x6   :  { %39 = dma.hbm_to_vmem [thread:$0]  %s32_s26, 2048, %s34_s28, [#allocation6], %s404_s9, %s404_s9, %s405_s10  }
   0x7   :  { %s23_s12 = sshll.u32 %s406_s11, 4  ;;  %s46_s15 = sshll.u32 %s477_s3, 4  ;;  %s24_s12 = int_to_ptr.vmem [resolvable:$true] %s23_s12  ;;  %s47_s15 = int_to_ptr.hbm [resolvable:$true] %s46_s15 }
   0x8   :  { %26 = dma.hbm_to_vmem [thread:$0]  %s22_s8, 128, %s24_s12, [#allocation3]  }
   0x9   :  { %s61_s17 = sshll.u32 %s479_s5, 4  ;;  %s407_s18 = smov [#allocation7]   ;;  %s62_s17 = int_to_ptr.hbm [resolvable:$true] %s61_s17 }
   0xa   :  { %s48_s19 = sshll.u32 %s407_s18, 4  ;;  %s408_s0 = smov [#allocation8]   ;;  %s49_s19 = int_to_ptr.vmem [resolvable:$true] %s48_s19 }
   0xb   :  { %54 = dma.hbm_to_vmem [thread:$0]  %s47_s15, 2048, %s49_s19, [#allocation6], %s404_s9, %s404_s9, %s405_s10  }
   0xc   :  { %s63_s20 = sshll.u32 %s408_s0, 4  ;;  %s64_s20 = int_to_ptr.vmem [resolvable:$true] %s63_s20 }
   0xd   :  { %69 = dma.hbm_to_vmem [thread:$0]  %s62_s17, 2048, %s64_s20, [#allocation9], %s404_s9, %s404_s9, %s405_s10  }
   0xe   :  { %395 = dma.done.wait [#allocation3], 128  }
   0xf   :  { %396 = vsyncadd [#allocation3], 4294967168 }
  0x10   :  { %397 = dma.done.wait [#allocation6], 4096  }
  0x11   :  { %398 = vsyncadd [#allocation6], 4294963200 }
  0x12   :  { %399 = dma.done.wait [#allocation9], 2048  }
  0x13   :  { %400 = vsyncadd [#allocation9], 4294965248  ;;  %v104_v0 = vld [vmem:[#allocation5 + $0x78] sm:$0xff]  ;;  %v103_v1 = vld [vmem:[#allocation5 + $0x70] sm:$0xff]  ;;  %s247_s26 = sshll.u32 %s481_s7, 4  ;;  %s248_s26 = int_to_ptr.hbm [resolvable:$true] %s247_s26 }
  0x14   :  { %109 = vmatpush.msra.mxu0 %v104_v0  ;;  %v102_v2 = vld [vmem:[#allocation5 + $0x68] sm:$0xff]  ;;  %v101_v3 = vld [vmem:[#allocation5 + $0x60] sm:$0xff]  ;;  %v145_v4 = vld [vmem:[#allocation7 + $0x78] sm:$0xff] }
  0x15   :  { %v100_v5 = vld [vmem:[#allocation5 + $0x58] sm:$0xff]  ;;  %150 = vmatpush.msra.mxu1 %v145_v4  ;;  %v144_v6 = vld [vmem:[#allocation7 + $0x70] sm:$0xff]  ;;  %v143_v7 = vld [vmem:[#allocation7 + $0x68] sm:$0xff] }
  0x16   :  { %110 = vmatpush.msra.mxu0 %v103_v1  ;;  %v99_v8 = vld [vmem:[#allocation5 + $0x50] sm:$0xff]  ;;  %v142_v9 = vld [vmem:[#allocation7 + $0x60] sm:$0xff]  ;;  %v98_v10 = vld [vmem:[#allocation5 + $0x48] sm:$0xff] }
  0x17   :  { %151 = vmatpush.msra.mxu1 %v144_v6  ;;  %v141_v11 = vld [vmem:[#allocation7 + $0x58] sm:$0xff]  ;;  %v97_v12 = vld [vmem:[#allocation5 + $0x40] sm:$0xff]  ;;  %v140_v13 = vld [vmem:[#allocation7 + $0x50] sm:$0xff] }
  0x18   :  { %111 = vmatpush.msra.mxu0 %v102_v2  ;;  %v96_v14 = vld [vmem:[#allocation5 + $0x38] sm:$0xff]  ;;  %v139_v15 = vld [vmem:[#allocation7 + $0x48] sm:$0xff]  ;;  %v95_v16 = vld [vmem:[#allocation5 + $0x30] sm:$0xff] }
  0x19   :  { %152 = vmatpush.msra.mxu1 %v143_v7  ;;  %v138_v17 = vld [vmem:[#allocation7 + $0x40] sm:$0xff]  ;;  %v94_v18 = vld [vmem:[#allocation5 + $0x28] sm:$0xff]  ;;  %v137_v19 = vld [vmem:[#allocation7 + $0x38] sm:$0xff] }
  0x1a   :  { %112 = vmatpush.msra.mxu0 %v101_v3  ;;  %v93_v20 = vld [vmem:[#allocation5 + $0x20] sm:$0xff]  ;;  %v136_v21 = vld [vmem:[#allocation7 + $0x30] sm:$0xff]  ;;  %v92_v22 = vld [vmem:[#allocation5 + $0x18] sm:$0xff] }
  0x1b   :  { %153 = vmatpush.msra.mxu1 %v142_v9  ;;  %v135_v23 = vld [vmem:[#allocation7 + $0x28] sm:$0xff]  ;;  %v91_v24 = vld [vmem:[#allocation5 + $0x10] sm:$0xff]  ;;  %v134_v25 = vld [vmem:[#allocation7 + $0x20] sm:$0xff] }
  0x1c   :  { %113 = vmatpush.msra.mxu0 %v100_v5  ;;  %v90_v26 = vld [vmem:[#allocation5 + $0x8] sm:$0xff]  ;;  %v133_v27 = vld [vmem:[#allocation7 + $0x18] sm:$0xff]  ;;  %v89_v28 = vld [vmem:[#allocation5] sm:$0xff] }
  0x1d   :  { %154 = vmatpush.msra.mxu1 %v141_v11  ;;  %v88_v29 = vld [vmem:[#allocation2] sm:$0xff]  ;;  %v132_v30 = vld [vmem:[#allocation7 + $0x10] sm:$0xff]  ;;  %v131_v31 = vld [vmem:[#allocation7 + $0x8] sm:$0xff] }
  0x1e   :  { %114 = vmatpush.msra.mxu0 %v99_v8  ;;  %v130_v32 = vld [vmem:[#allocation7] sm:$0xff]  ;;  %v186_v33 = vld [vmem:[#allocation8 + $0x78] sm:$0xff]  ;;  %v185_v34 = vld [vmem:[#allocation8 + $0x70] sm:$0xff] }
  0x1f   :  { %155 = vmatpush.msra.mxu1 %v140_v13  ;;  %191 = vmatpush.msra.mxu2 %v186_v33  ;;  %v184_v35 = vld [vmem:[#allocation8 + $0x68] sm:$0xff]  ;;  %v183_v36 = vld [vmem:[#allocation8 + $0x60] sm:$0xff]  ;;  %v182_v37 = vld [vmem:[#allocation8 + $0x58] sm:$0xff] }
  0x20   :  { %115 = vmatpush.msra.mxu0 %v98_v10  ;;  %v181_v38 = vld [vmem:[#allocation8 + $0x50] sm:$0xff]  ;;  %v180_v39 = vld [vmem:[#allocation8 + $0x48] sm:$0xff]  ;;  %v179_v40 = vld [vmem:[#allocation8 + $0x40] sm:$0xff] }
  0x21   :  { %156 = vmatpush.msra.mxu1 %v139_v15  ;;  %192 = vmatpush.msra.mxu2 %v185_v34  ;;  %v178_v41 = vld [vmem:[#allocation8 + $0x38] sm:$0xff]  ;;  %v177_v42 = vld [vmem:[#allocation8 + $0x30] sm:$0xff]  ;;  %v176_v43 = vld [vmem:[#allocation8 + $0x28] sm:$0xff] }
  0x22   :  { %116 = vmatpush.msra.mxu0 %v97_v12  ;;  %v175_v44 = vld [vmem:[#allocation8 + $0x20] sm:$0xff]  ;;  %v174_v45 = vld [vmem:[#allocation8 + $0x18] sm:$0xff]  ;;  %v173_v50 = vld [vmem:[#allocation8 + $0x10] sm:$0xff] }
  0x23   :  { %157 = vmatpush.msra.mxu1 %v138_v17  ;;  %193 = vmatpush.msra.mxu2 %v184_v35  ;;  %v266_v46 = vld [vmem:[%s476_s2] ss:$0 sm:$0xff]  ;;  %v172_v51 = vld [vmem:[#allocation8 + $0x8] sm:$0xff]  ;;  %v171_v52 = vld [vmem:[#allocation8] sm:$0xff] }
  0x24   :  { %117 = vmatpush.msra.mxu0 %v96_v14  ;;  %v267_v53 = vld [vmem:[%s478_s4] ss:$0 sm:$0xff]  ;;  %s409_s4 = smov [#allocation10]  }
  0x25   :  { %158 = vmatpush.msra.mxu1 %v137_v19  ;;  %194 = vmatpush.msra.mxu2 %v183_v36  ;;  %v268_v57 = vld [vmem:[%s480_s6] ss:$0 sm:$0xff]  ;;  %s245_s6 = sshll.u32 %s409_s4, 4  ;;  %s246_s6 = int_to_ptr.vmem [resolvable:$true] %s245_s6 }
  0x26   :  { %118 = vmatpush.msra.mxu0 %v95_v16 }
  0x27   :  { %159 = vmatpush.msra.mxu1 %v136_v21  ;;  %195 = vmatpush.msra.mxu2 %v182_v37 }
  0x28   :  { %119 = vmatpush.msra.mxu0 %v94_v18 }
  0x29   :  { %160 = vmatpush.msra.mxu1 %v135_v23  ;;  %196 = vmatpush.msra.mxu2 %v181_v38 }
  0x2a   :  { %120 = vmatpush.msra.mxu0 %v93_v20 }
  0x2b   :  { %161 = vmatpush.msra.mxu1 %v134_v25  ;;  %197 = vmatpush.msra.mxu2 %v180_v39 }
  0x2c   :  { %121 = vmatpush.msra.mxu0 %v92_v22 }
  0x2d   :  { %162 = vmatpush.msra.mxu1 %v133_v27  ;;  %198 = vmatpush.msra.mxu2 %v179_v40 }
  0x2e   :  { %122 = vmatpush.msra.mxu0 %v91_v24 }
  0x2f   :  { %163 = vmatpush.msra.mxu1 %v132_v30  ;;  %199 = vmatpush.msra.mxu2 %v178_v41 }
  0x30   :  { %123 = vmatpush.msra.mxu0 %v90_v26 }
  0x31   :  { %164 = vmatpush.msra.mxu1 %v131_v31  ;;  %200 = vmatpush.msra.mxu2 %v177_v42 }
  0x32   :  { %124 = vmatpush.msra.mxu0 %v89_v28 }
  0x33   :  { %125 = vmatmul.f32.vlgmr.msra.gmra.mxu0 %v88_v29  ;;  %165 = vmatpush.msra.mxu1 %v130_v32 }
  0x34   :  { %201 = vmatpush.msra.mxu2 %v176_v43 }
  0x36   :  { %202 = vmatpush.msra.mxu2 %v175_v44 }
  0x38   :  { %203 = vmatpush.msra.mxu2 %v174_v45 }
  0x3a   :  { %204 = vmatpush.msra.mxu2 %v173_v50 }
  0x3c   :  { %205 = vmatpush.msra.mxu2 %v172_v51 }
  0x3e   :  { %206 = vmatpush.msra.mxu2 %v171_v52 }
  0xb0   :  { %v126_v47 = vpop.f32.mrf.mxu0 }
  0xb1   :  { %v127_v48 = vadd.f32 %v266_v46, %v126_v47 }
  0xb3   :  { %v129_v49 = vmax.f32 %v127_v48, 0.0 }
  0xb5   :  { %166 = vmatmul.f32.vlgmr.msra.gmra.mxu1 %v129_v49 }
 0x132   :  { %v167_v54 = vpop.f32.mrf.mxu1 }
 0x133   :  { %v168_v55 = vadd.f32 %v267_v53, %v167_v54 }
 0x135   :  { %v170_v56 = vmax.f32 %v168_v55, 0.0 }
 0x137   :  { %207 = vmatmul.f32.vlgmr.msra.gmra.mxu2 %v170_v56 }
 0x1ba   :  { %v208_v58 = vpop.f32.mrf.mxu2 }
 0x1bb   :  { %v209_v59 = vadd.f32 %v268_v57, %v208_v58 }
 0x1bd   :  { %v211_v60 = vmax.f32 %v209_v59, 0.0 }
 0x1bf   :  { %212 = vmax.xlane.f32.xlu0 %v211_v60 }
 0x232   :  { %v213_v61 = vpop.xlane.xlu0 %212 }
 0x233   :  { %v214_v62 = vsub.f32 %v211_v60, %v213_v61  ;;  %v219_v1 = vsub.f32 0.0, %v213_v61 }
 0x235   :  { %v215_v63 = vmul.f32 1.442695, %v214_v62  ;;  %v220_v2 = vmul.f32 1.442695, %v219_v1 }
 0x237   :  { %269 = vpow2.f32 %v215_v63 }
 0x238   :  { %271 = vpow2.f32 %v220_v2 }
 0x23d   :  { %v270_v0 = vpop.eup %269 }
 0x23e   :  { %217 = vadd.xlane.f32.xlu0 %v270_v0  ;;  %v272_v3 = vpop.eup %271 }
 0x23f   :  { %v222_v4 = vmul.f32 120.0, %v272_v3 }
 0x2b1   :  { %v218_v5 = vpop.xlane.xlu0 %217 }
 0x2b2   :  { %v223_v6 = vsub.f32 %v218_v5, %v222_v4 }
 0x2b4   :  { %273 = vrcp.f32 %v223_v6  ;;  %v235_v10 = vand.u32 2147483648, %v223_v6  ;;  %v233_v12 = vand.u32 2147483647, %v223_v6  ;;  %vm229_vm1 = vweird.f32 %v223_v6 }
 0x2b6   :  { %v236_v14 = vor.u32 1.1754944e-38, %v235_v10  ;;  %vm234_vm3 = vcmp.eq.f32.partialorder %v233_v12, 8.507059e+37 }
 0x2ba   :  { %v274_v7 = vpop.eup %273 }
 0x2bb   :  { %v225_v8 = vmul.f32 %v274_v7, %v223_v6  ;;  %vm230_vm0 = vweird.f32 %v274_v7 }
 0x2bc   :  { %vm231_vm2 = vmor %vm229_vm1, %vm230_vm0 }
 0x2bd   :  { %v226_v9 = vsub.f32 1.0, %v225_v8 }
 0x2bf   :  { %v227_v11 = vmul.f32 %v274_v7, %v226_v9 }
 0x2c1   :  { %v228_v13 = vadd.f32 %v274_v7, %v227_v11 }
 0x2c3   :  { %v232_v15 = vsel %vm231_vm2, %v274_v7, %v228_v13 }
 0x2c4   :  { %v237_v16 = vsel %vm234_vm3, %v236_v14, %v232_v15 }
 0x2c5   :  { %v238_v17 = vmul.f32 %v270_v0, %v237_v16 }
 0x2c7   :  { %239 = vst [vmem:[#allocation10] sm:$0xff] %v238_v17 }
 0x2c8   :  { %250 = dma.vmem_to_hbm [thread:$0]  %s246_s6, 128, %s248_s26, [#allocation4]  }
 0x2c9   :  { %401 = dma.done.wait [#allocation4], 128  }
 0x2ca   :  { %402 = vsyncadd [#allocation4], 4294967168 }
 0x2cb   :  { %255 = vsyncpa [#allocation3], 1 }
 0x2cc   :  { %256 = vsyncpa [#allocation6], 1 }
 0x2cd   :  { %257 = vsyncpa [#allocation9], 1 }
 0x2ce   :  { %258 = vsyncpa [#allocation4], 1 }

</bundles_post_ra>
